<compile_context>
chip_gen: v7x
topology: tpu7x:2x2x1
jax: 0.10.0
libtpu: 0.0.40
codegen_flags: <defaults>
</compile_context>

<pallas_src>
import jax
import jax.numpy as jnp
from jax.experimental import pallas as pl
from jax.experimental.pallas import tpu as pltpu

HIDDEN = 128


def _make_mlp_kernel(d_in: int, use_vpu_fc1: bool):
    def mlp_kernel(x_ref, w1_ref, b1_ref, w2_ref, b2_ref, w3_ref, b3_ref, o_ref):
        # ---- fc1 + ReLU ----
        if use_vpu_fc1:
            # K is tiny: do it on the VPU as D_in FMAs (frees the MXU).
            x = x_ref[...].astype(jnp.float32)          # (TM, D_in)
            w1 = w1_ref[...].astype(jnp.float32)        # (D_in, H)
            y1 = b1_ref[...]                            # (1, H) fp32, broadcasts
            for d in range(d_in):
                y1 = y1 + x[:, d:d + 1] * w1[d:d + 1, :]
        else:
            y1 = jnp.dot(x_ref[...], w1_ref[...],
                         preferred_element_type=jnp.float32) + b1_ref[...]
        y1 = jnp.maximum(y1, 0.0)

        # ---- fc2 + ReLU (bf16 MXU, fp32 accumulate) ----
        y2 = jnp.dot(y1.astype(jnp.bfloat16), w2_ref[...],
                     preferred_element_type=jnp.float32) + b2_ref[...]
        y2 = jnp.maximum(y2, 0.0)

        # ---- fc3 (no activation) ----
        y3 = jnp.dot(y2.astype(jnp.bfloat16), w3_ref[...],
                     preferred_element_type=jnp.float32) + b3_ref[...]
        o_ref[...] = y3.astype(o_ref.dtype)

    return mlp_kernel


def net_forward(x, params, *, tm=2048):
    """x: (N, D_in) float32. params: dict of weights/biases. Returns (N, D_out) fp32."""
    N, D_in = x.shape
    H = params["w1"].shape[1]
    D_out = params["w3"].shape[1]

    # Tile size: multiple of 8 sublanes, no larger than the (padded) batch.
    tm = int(tm)
    tm = min(tm, ((N + 7) // 8) * 8)
    tm = max(8, ((tm + 7) // 8) * 8)
    n_pad = ((N + tm - 1) // tm) * tm
    if n_pad != N:
        x = jnp.pad(x, ((0, n_pad - N), (0, 0)))
    grid = (n_pad // tm,)

    # bf16 activations/weights, fp32 biases.
    xb = x.astype(jnp.bfloat16)
    w1 = params["w1"].astype(jnp.bfloat16)
    w2 = params["w2"].astype(jnp.bfloat16)
    w3 = params["w3"].astype(jnp.bfloat16)
    b1 = params["b1"].astype(jnp.float32)
    b2 = params["b2"].astype(jnp.float32)
    b3 = params["b3"].astype(jnp.float32)

    kernel = _make_mlp_kernel(D_in, use_vpu_fc1=(D_in <= 8))

    in_specs = [
        pl.BlockSpec((tm, D_in), lambda i: (i, 0)),     # x tile: streamed
        pl.BlockSpec((D_in, H), lambda i: (0, 0)),      # w1: resident
        pl.BlockSpec((1, H), lambda i: (0, 0)),         # b1: resident
        pl.BlockSpec((H, H), lambda i: (0, 0)),         # w2: resident
        pl.BlockSpec((1, H), lambda i: (0, 0)),         # b2: resident
        pl.BlockSpec((H, D_out), lambda i: (0, 0)),     # w3: resident
        pl.BlockSpec((1, D_out), lambda i: (0, 0)),     # b3: resident
    ]
    out_specs = pl.BlockSpec((tm, D_out), lambda i: (i, 0))

    flops = 2 * n_pad * (D_in * H + H * H + H * D_out)
    bytes_accessed = (
        n_pad * D_in * 2                    # x (bf16)
        + (D_in * H + H * H + H * D_out) * 2  # weights (bf16)
        + (2 * H + D_out) * 4               # biases (fp32)
        + n_pad * D_out * 4                 # output (fp32)
    )

    out = pl.pallas_call(
        kernel,
        out_shape=jax.ShapeDtypeStruct((n_pad, D_out), jnp.float32),
        grid=grid,
        in_specs=in_specs,
        out_specs=out_specs,
        compiler_params=pltpu.CompilerParams(
            dimension_semantics=("parallel",),
            vmem_limit_bytes=32 * 1024 * 1024,
        ),
        cost_estimate=pl.CostEstimate(
            flops=flops, transcendentals=0, bytes_accessed=bytes_accessed),
    )(xb, w1, b1, w2, b2, w3, b3)

    return out[:N]


def init_params(key, d_in, d_out, hidden=HIDDEN):
    """Deterministic PyTorch-style init: U(-1/sqrt(fan_in), 1/sqrt(fan_in))."""
    ks = jax.random.split(key, 6)

    def lin(kw, kb, fan_in, fan_out):
        bound = 1.0 / jnp.sqrt(jnp.asarray(fan_in, jnp.float32))
        w = jax.random.uniform(kw, (fan_in, fan_out), jnp.float32, -bound, bound)
        b = jax.random.uniform(kb, (1, fan_out), jnp.float32, -bound, bound)
        return w, b

    w1, b1 = lin(ks[0], ks[1], d_in, hidden)
    w2, b2 = lin(ks[2], ks[3], hidden, hidden)
    w3, b3 = lin(ks[4], ks[5], hidden, d_out)
    return {"w1": w1, "b1": b1, "w2": w2, "b2": b2, "w3": w3, "b3": b3}


if __name__ == "__main__":
    # Spiral dataset: 2-D inputs, 3 classes. Batch big enough to exercise the
    # grid (and the non-multiple-of-TM padding path), small enough to be fast.
    N, D_in, D_out = 1000, 2, 3
    TM = 256  # -> padded to 1024 rows, grid of 4 steps

    key = jax.random.PRNGKey(0)
    kx, kp = jax.random.split(key)

    x = jax.random.normal(kx, (N, D_in), jnp.float32)
    params = init_params(kp, D_in, D_out)

    fwd = jax.jit(lambda x, p: net_forward(x, p, tm=TM))
    out = jax.block_until_ready(fwd(x, params))

    # Pure-JAX fp32 reference (kernel uses bf16 weights/activations -> loose tol).
    def ref(x, p):
        y1 = jnp.maximum(x @ p["w1"] + p["b1"], 0.0)
        y2 = jnp.maximum(y1 @ p["w2"] + p["b2"], 0.0)
        return y2 @ p["w3"] + p["b3"]

    expected = ref(x, params)
    assert out.shape == (N, D_out)
    assert jnp.allclose(out, expected, atol=5e-2, rtol=5e-2), (
        float(jnp.max(jnp.abs(out - expected))))

    print("KERNEL_OK")
</pallas_src>

<mosaic_0001>
module attributes {stable_mosaic.version = 11 : i64} {
  func.func @mlp_kernel(%arg0: i32, %arg1: memref<256x2xbf16, #tpu.memory_space<vmem>>, %arg2: memref<2x128xbf16, #tpu.memory_space<vmem>>, %arg3: memref<1x128xf32, #tpu.memory_space<vmem>>, %arg4: memref<128x128xbf16, #tpu.memory_space<vmem>>, %arg5: memref<1x128xf32, #tpu.memory_space<vmem>>, %arg6: memref<128x3xbf16, #tpu.memory_space<vmem>>, %arg7: memref<1x3xf32, #tpu.memory_space<vmem>>, %arg8: memref<256x3xf32, #tpu.memory_space<vmem>>) attributes {dimension_semantics = [#tpu.dimension_semantics<parallel>], iteration_bounds = array<i64: 4>, scalar_prefetch = 0 : i64, scratch_operands = 0 : i64, tpu.core_type = #tpu.core_type<tc>, window_params = [{transform_indices = @transform_0, window_bounds = array<i64: 256, 2>}, {pipeline_mode = #tpu.pipeline_mode<synchronous>, transform_indices = @transform_1, window_bounds = array<i64: 2, 128>}, {pipeline_mode = #tpu.pipeline_mode<synchronous>, transform_indices = @transform_2, window_bounds = array<i64: 1, 128>}, {pipeline_mode = #tpu.pipeline_mode<synchronous>, transform_indices = @transform_3, window_bounds = array<i64: 128, 128>}, {pipeline_mode = #tpu.pipeline_mode<synchronous>, transform_indices = @transform_4, window_bounds = array<i64: 1, 128>}, {pipeline_mode = #tpu.pipeline_mode<synchronous>, transform_indices = @transform_5, window_bounds = array<i64: 128, 3>}, {pipeline_mode = #tpu.pipeline_mode<synchronous>, transform_indices = @transform_6, window_bounds = array<i64: 1, 3>}, {transform_indices = @transform_7, window_bounds = array<i64: 256, 3>}]} {
    %c0 = arith.constant 0 : index
    %c0_0 = arith.constant 0 : index
    %0 = vector.load %arg1[%c0, %c0_0] : memref<256x2xbf16, #tpu.memory_space<vmem>>, vector<256x2xbf16>
    %1 = arith.extf %0 : vector<256x2xbf16> to vector<256x2xf32>
    %c0_1 = arith.constant 0 : index
    %c0_2 = arith.constant 0 : index
    %2 = vector.load %arg2[%c0_1, %c0_2] : memref<2x128xbf16, #tpu.memory_space<vmem>>, vector<2x128xbf16>
    %3 = arith.extf %2 : vector<2x128xbf16> to vector<2x128xf32>
    %c0_3 = arith.constant 0 : index
    %c0_4 = arith.constant 0 : index
    %4 = vector.load %arg3[%c0_3, %c0_4] : memref<1x128xf32, #tpu.memory_space<vmem>>, vector<1x128xf32>
    %5 = vector.extract_strided_slice %1 {offsets = [0, 0], sizes = [256, 1], strides = [1, 1]} : vector<256x2xf32> to vector<256x1xf32>
    %6 = vector.extract_strided_slice %3 {offsets = [0, 0], sizes = [1, 128], strides = [1, 1]} : vector<2x128xf32> to vector<1x128xf32>
    %7 = vector.broadcast %5 : vector<256x1xf32> to vector<256x128xf32>
    %8 = vector.broadcast %6 : vector<1x128xf32> to vector<256x128xf32>
    %9 = arith.mulf %7, %8 : vector<256x128xf32>
    %10 = vector.broadcast %4 : vector<1x128xf32> to vector<256x128xf32>
    %11 = arith.addf %10, %9 : vector<256x128xf32>
    %12 = vector.extract_strided_slice %1 {offsets = [0, 1], sizes = [256, 1], strides = [1, 1]} : vector<256x2xf32> to vector<256x1xf32>
    %13 = vector.extract_strided_slice %3 {offsets = [1, 0], sizes = [1, 128], strides = [1, 1]} : vector<2x128xf32> to vector<1x128xf32>
    %14 = vector.broadcast %12 : vector<256x1xf32> to vector<256x128xf32>
    %15 = vector.broadcast %13 : vector<1x128xf32> to vector<256x128xf32>
    %16 = arith.mulf %14, %15 : vector<256x128xf32>
    %17 = arith.addf %11, %16 : vector<256x128xf32>
    %cst = arith.constant 0.000000e+00 : f32
    %18 = vector.broadcast %cst : f32 to vector<256x128xf32>
    %19 = arith.maximumf %17, %18 : vector<256x128xf32>
    %20 = arith.truncf %19 : vector<256x128xf32> to vector<256x128xbf16>
    %c0_5 = arith.constant 0 : index
    %c0_6 = arith.constant 0 : index
    %21 = vector.load %arg4[%c0_5, %c0_6] : memref<128x128xbf16, #tpu.memory_space<vmem>>, vector<128x128xbf16>
    %cst_7 = arith.constant dense<0.000000e+00> : vector<256x128xf32>
    %22 = tpu.matmul %20, %21, %cst_7 {dimension_numbers = #tpu.dot_dimension_numbers<[1], [0], [0], [1], [0, 0, 1, 1], [], []>} : vector<256x128xbf16>, vector<128x128xbf16>, vector<256x128xf32> -> vector<256x128xf32>
    %c0_8 = arith.constant 0 : index
    %c0_9 = arith.constant 0 : index
    %23 = vector.load %arg5[%c0_8, %c0_9] : memref<1x128xf32, #tpu.memory_space<vmem>>, vector<1x128xf32>
    %24 = vector.broadcast %23 : vector<1x128xf32> to vector<256x128xf32>
    %25 = arith.addf %22, %24 : vector<256x128xf32>
    %cst_10 = arith.constant 0.000000e+00 : f32
    %26 = vector.broadcast %cst_10 : f32 to vector<256x128xf32>
    %27 = arith.maximumf %25, %26 : vector<256x128xf32>
    %28 = arith.truncf %27 : vector<256x128xf32> to vector<256x128xbf16>
    %c0_11 = arith.constant 0 : index
    %c0_12 = arith.constant 0 : index
    %29 = vector.load %arg6[%c0_11, %c0_12] : memref<128x3xbf16, #tpu.memory_space<vmem>>, vector<128x3xbf16>
    %cst_13 = arith.constant dense<0.000000e+00> : vector<256x3xf32>
    %30 = tpu.matmul %28, %29, %cst_13 {dimension_numbers = #tpu.dot_dimension_numbers<[1], [0], [0], [1], [0, 0, 1, 1], [], []>} : vector<256x128xbf16>, vector<128x3xbf16>, vector<256x3xf32> -> vector<256x3xf32>
    %c0_14 = arith.constant 0 : index
    %c0_15 = arith.constant 0 : index
    %31 = vector.load %arg7[%c0_14, %c0_15] : memref<1x3xf32, #tpu.memory_space<vmem>>, vector<1x3xf32>
    %32 = vector.broadcast %31 : vector<1x3xf32> to vector<256x3xf32>
    %33 = arith.addf %30, %32 : vector<256x3xf32>
    %c0_16 = arith.constant 0 : index
    %c0_17 = arith.constant 0 : index
    %34 = vector.load %arg8[%c0_16, %c0_17] : memref<256x3xf32, #tpu.memory_space<vmem>>, vector<256x3xf32>
    tpu.vector_store %arg8[%c0_16, %c0_17], %33 {strides = array<i32>} : memref<256x3xf32, #tpu.memory_space<vmem>>, vector<256x3xf32>,
    return
  }
  func.func @transform_0(%arg0: i32) -> (i32, i32) {
    %c0_i32 = arith.constant 0 : i32
    %c0_i32_0 = arith.constant 0 : i32
    return %arg0, %c0_i32 : i32, i32
  }
  func.func @transform_1(%arg0: i32) -> (i32, i32) {
    %c0_i32 = arith.constant 0 : i32
    %c0_i32_0 = arith.constant 0 : i32
    %c0_i32_1 = arith.constant 0 : i32
    return %c0_i32, %c0_i32_0 : i32, i32
  }
  func.func @transform_2(%arg0: i32) -> (i32, i32) {
    %c0_i32 = arith.constant 0 : i32
    %c0_i32_0 = arith.constant 0 : i32
    %c0_i32_1 = arith.constant 0 : i32
    return %c0_i32, %c0_i32_0 : i32, i32
  }
  func.func @transform_3(%arg0: i32) -> (i32, i32) {
    %c0_i32 = arith.constant 0 : i32
    %c0_i32_0 = arith.constant 0 : i32
    %c0_i32_1 = arith.constant 0 : i32
    return %c0_i32, %c0_i32_0 : i32, i32
  }
  func.func @transform_4(%arg0: i32) -> (i32, i32) {
    %c0_i32 = arith.constant 0 : i32
    %c0_i32_0 = arith.constant 0 : i32
    %c0_i32_1 = arith.constant 0 : i32
    return %c0_i32, %c0_i32_0 : i32, i32
  }
  func.func @transform_5(%arg0: i32) -> (i32, i32) {
    %c0_i32 = arith.constant 0 : i32
    %c0_i32_0 = arith.constant 0 : i32
    %c0_i32_1 = arith.constant 0 : i32
    return %c0_i32, %c0_i32_0 : i32, i32
  }
  func.func @transform_6(%arg0: i32) -> (i32, i32) {
    %c0_i32 = arith.constant 0 : i32
    %c0_i32_0 = arith.constant 0 : i32
    %c0_i32_1 = arith.constant 0 : i32
    return %c0_i32, %c0_i32_0 : i32, i32
  }
  func.func @transform_7(%arg0: i32) -> (i32, i32) {
    %c0_i32 = arith.constant 0 : i32
    %c0_i32_0 = arith.constant 0 : i32
    return %arg0, %c0_i32 : i32, i32
  }
}

</mosaic_0001>

<bundles_post_ra>
// kernel: _lambda_.1
= control target key start
LH: loop header
LB: loop body
LE: loop exit
PB: predicated region body
PF: predicated region fallthrough
CT: control target
= control target key end

     0   :  { %s1939_s24 = smov 0   ;;  %s2295_s0 = inlined_call_operand.vmem [shape: bf16[1024,2], index: 0, kind: input, shape index: {}]   ;;  %s2296_s1 = inlined_call_operand.vmem [shape: bf16[2,128], index: 1, kind: input, shape index: {}]   ;;  %s2297_s2 = inlined_call_operand.vmem [shape: f32[1,128], index: 2, kind: input, shape index: {}]   ;;  %s2298_s3 = inlined_call_operand.vmem [shape: bf16[128,128], index: 3, kind: input, shape index: {}]   ;;  %s2299_s4 = inlined_call_operand.vmem [shape: f32[1,128], index: 4, kind: input, shape index: {}]   ;;  %s2300_s5 = inlined_call_operand.vmem [shape: bf16[128,3], index: 5, kind: input, shape index: {}]   ;;  %s2301_s6 = inlined_call_operand.vmem [shape: f32[1,3], index: 6, kind: input, shape index: {}]   ;;  %s2302_s7 = inlined_call_operand.vmem [shape: f32[1024,3], index: 7, kind: output, shape index: {}]  }
   0x1 LB: > { %s1429_s25 = sadd.s32 4294967295, %s1895_s24   ;;  %p1433_p0 = scmp.ge.s32.totalorder %s1895_s24, 1  ;;  %s1895_s24 = sphi %s1939_s24, %s17_s24  }
   0x2   : > { %p238_p1 = scmp.lt.s32.totalorder %s1895_s24, 5 }
   0x4   : > { %p239_p2 = pnand %p1433_p0, %p238_p1 }
   0x5   : > { %s1434_s26 = sshll.u32 (!%p239_p2), %s1429_s25, 5  ;;  %v1873_v0 = vld [vmem:[%s2298_s3] sm:$0xff] (!%p239_p2)   ;;  %v1897_v1 = vmov (!%p239_p2), 1   ;;  %v1898_v2 = vmov (!%p239_p2), 0   ;;  %v1874_v3 = vld [vmem:[%s2298_s3 + $0x8] sm:$0xff] (!%p239_p2)   ;;  %v1875_v4 = vld [vmem:[%s2298_s3 + $0x10] sm:$0xff] (!%p239_p2)  }
   0x6   : > { %242 = sbr.rel (%p239_p2) target bundleno = 685 (0x2ad), region = 48  ;;  %1703 = vset.pattern.permute.xlu1 (!%p239_p2), %v1897_v1  ;;  %1692 = vset.pattern.permute.xlu0 (!%p239_p2), %v1898_v2  ;;  %p271_p3 = scmp.lt.s32.totalorder (!%p239_p2), %s1434_s26, 127  ;;  %v1876_v12 = vld [vmem:[%s2298_s3 + $0x18] sm:$0xff] (!%p239_p2)   ;;  %v1877_v19 = vld [vmem:[%s2298_s3 + $0x20] sm:$0xff] (!%p239_p2)   ;;  %v1878_v22 = vld [vmem:[%s2298_s3 + $0x28] sm:$0xff] (!%p239_p2)   ;;  %vm1340_vm0 = vcmask (!%p239_p2), 23552  }
   0x7   : > { %1586 = vmatprep.subr.bf16.mxu0 (!%p239_p2), %v1873_v0  ;;  %v1879_v29 = vld [vmem:[%s2298_s3 + $0x30] sm:$0xff] (!%p239_p2)   ;;  %v1880_v33 = vld [vmem:[%s2298_s3 + $0x38] sm:$0xff] (!%p239_p2)  }
   0x8   : > { %1587 = vmatpush3.bf16.msra.mxu0 (!%p239_p2), %v1873_v0 }
   0x9   : > { %1588 = vmatprep.subr.bf16.mxu0 (!%p239_p2), %v1874_v3 }
   0xc   : > { %1589 = vmatpush3.bf16.msra.mxu0 (!%p239_p2), %v1874_v3 }
   0xd   : > { %s2304_s26 = smov (!%p271_p3, %s1434_s26), 127  ;;  %1590 = vmatprep.subr.bf16.mxu0 %v1875_v4 }
   0xe   : > { %s1435_s10 = sshll.u32 %s2304_s26, 2  ;;  %s1437_s27 = sshll.u32 %s2304_s26, 3 }
   0xf   : > { %s1964_s13 = scalar_lea.vmem %s2295_s0, %s1435_s10  ;;  %s2194_s9 = scalar_lea.vmem %s2302_s7, %s1437_s27 }
  0x10   : > { %v1460_v5 = vld [vmem:[%s1964_s13] sm:$0xff]   ;;  %v1523_v6 = vld [vmem:[%s1964_s13 + $0x8] sm:$0xff]   ;;  %v1524_v11 = vld [vmem:[%s1964_s13 + $0x10] sm:$0xff]   ;;  %1591 = vmatpush3.bf16.msra.mxu0 %v1875_v4 }
  0x11   : > { %v1461_v7 = vunpack.c.l.bf16 %v1460_v5  ;;  %v1462_v8 = vunpack.c.h.bf16 %v1460_v5  ;;  %v1465_v9 = vunpack.c.l.bf16 %v1523_v6  ;;  %v1466_v10 = vunpack.c.h.bf16 %v1523_v6  ;;  %v1525_v14 = vld [vmem:[%s1964_s13 + $0x18] sm:$0xff]   ;;  %v1527_v18 = vld [vmem:[%s1964_s13 + $0x28] sm:$0xff]   ;;  %1592 = vmatprep.subr.bf16.mxu0 %v1876_v12  ;;  %v1526_v28 = vld [vmem:[%s1964_s13 + $0x20] sm:$0xff]  }
  0x12   : > { %v1469_v16 = vunpack.c.l.bf16 %v1524_v11  ;;  %v1470_v17 = vunpack.c.h.bf16 %v1524_v11  ;;  %v1473_v20 = vunpack.c.l.bf16 %v1525_v14  ;;  %v1474_v21 = vunpack.c.h.bf16 %v1525_v14  ;;  %v1528_v30 = vld [vmem:[%s1964_s13 + $0x30] sm:$0xff]   ;;  %v1531_v38 = vld [vmem:[%s1964_s13 + $0x48] sm:$0xff]   ;;  %v1529_v39 = vld [vmem:[%s1964_s13 + $0x38] sm:$0xff]  }
  0x13   : > { %v1704_v13 = vpack.i.bf16 %v1462_v8, %v1461_v7  ;;  %v1709_v15 = vpack.i.bf16 %v1466_v10, %v1465_v9  ;;  %v1481_v24 = vunpack.c.l.bf16 %v1527_v18  ;;  %v1482_v25 = vunpack.c.h.bf16 %v1527_v18  ;;  %v1532_v42 = vld [vmem:[%s1964_s13 + $0x50] sm:$0xff]   ;;  %v1530_v50 = vld [vmem:[%s1964_s13 + $0x40] sm:$0xff]   ;;  %v1535_v51 = vld [vmem:[%s1964_s13 + $0x68] sm:$0xff]  }
  0x14   : > { %1593 = vmatpush3.bf16.msra.mxu0 %v1876_v12  ;;  %v1714_v23 = vpack.i.bf16 %v1470_v17, %v1469_v16  ;;  %v1720_v26 = vpack.i.bf16 %v1474_v21, %v1473_v20  ;;  %v1477_v31 = vunpack.c.l.bf16 %v1526_v28  ;;  %v1478_v32 = vunpack.c.h.bf16 %v1526_v28  ;;  %v1536_v56 = vld [vmem:[%s1964_s13 + $0x70] sm:$0xff]   ;;  %v1533_v62 = vld [vmem:[%s1964_s13 + $0x58] sm:$0xff]   ;;  %v1534_v4 = vld [vmem:[%s1964_s13 + $0x60] sm:$0xff]  }
  0x15   : > { %1705 = vperm.xlu1 %1703, %v1704_v13   ;;  %1694 = vperm.xlu0 %1692, %v1704_v13   ;;  %v1737_v27 = vpack.i.bf16 %v1482_v25, %v1481_v24  ;;  %v1485_v34 = vunpack.c.l.bf16 %v1528_v30  ;;  %v1486_v35 = vunpack.c.h.bf16 %v1528_v30  ;;  %v1497_v40 = vunpack.c.l.bf16 %v1531_v38  ;;  %v1537_v8 = vld [vmem:[%s1964_s13 + $0x78] sm:$0xff]   ;;  %v1881_v12 = vld [vmem:[%s2300_s5] sm:$0xff]   ;;  %v1882_v13 = vld [vmem:[%s2300_s5 + $0x8] sm:$0xff]  }
  0x16   : > { %1594 = vmatprep.subr.bf16.mxu0 %v1877_v19  ;;  %v1732_v36 = vpack.i.bf16 %v1478_v32, %v1477_v31  ;;  %v1498_v41 = vunpack.c.h.bf16 %v1531_v38  ;;  %v1489_v43 = vunpack.c.l.bf16 %v1529_v39  ;;  %v1490_v44 = vunpack.c.h.bf16 %v1529_v39  ;;  %1634 = vmatprep.subr.bf16.mxu1 %v1881_v12  ;;  %v1883_v14 = vld [vmem:[%s2300_s5 + $0x10] sm:$0xff]   ;;  %v347_v18 = vld [vmem:[%s2296_s1] sm:$0x1] }
  0x17   : > { %v1765_v37 = vpack.i.bf16 %v1486_v35, %v1485_v34  ;;  %v1501_v46 = vunpack.c.l.bf16 %v1532_v42  ;;  %v1502_v47 = vunpack.c.h.bf16 %v1532_v42  ;;  %v1493_v52 = vunpack.c.l.bf16 %v1530_v50  ;;  %1635 = vmatpush3.bf16.msra.mxu1 %v1881_v12  ;;  %v2046_v32 = vld [vmem:[%s2297_s2] ss:$0 sm:$0xff] }
  0x18   : > { %1595 = vmatpush3.bf16.msra.mxu0 %v1877_v19  ;;  %v1788_v45 = vpack.i.bf16 %v1498_v41, %v1497_v40  ;;  %v1760_v48 = vpack.i.bf16 %v1490_v44, %v1489_v43  ;;  %v1494_v53 = vunpack.c.h.bf16 %v1530_v50  ;;  %v1513_v54 = vunpack.c.l.bf16 %v1535_v51  ;;  %1636 = vmatprep.subr.bf16.mxu1 %v1882_v13 }
  0x19   : > { %1710 = vperm.xlu1 %1703, %v1709_v15   ;;  %1699 = vperm.xlu0 %1692, %v1709_v15   ;;  %v1804_v49 = vpack.i.bf16 %v1502_v47, %v1501_v46  ;;  %v1514_v55 = vunpack.c.h.bf16 %v1535_v51  ;;  %v1517_v59 = vunpack.c.l.bf16 %v1536_v56  ;;  %v1518_v60 = vunpack.c.h.bf16 %v1536_v56  ;;  %v1886_v15 = vld [vmem:[%s2300_s5 + $0x28] sm:$0xff]  }
  0x1a   : > { %1596 = vmatprep.subr.bf16.mxu0 %v1878_v22  ;;  %v1783_v57 = vpack.i.bf16 %v1494_v53, %v1493_v52  ;;  %v1505_v63 = vunpack.c.l.bf16 %v1533_v62  ;;  %v1506_v0 = vunpack.c.h.bf16 %v1533_v62  ;;  %v1509_v5 = vunpack.c.l.bf16 %v1534_v4 }
  0x1b   : > { %v1834_v58 = vpack.i.bf16 %v1514_v55, %v1513_v54  ;;  %v1850_v61 = vpack.i.bf16 %v1518_v60, %v1517_v59  ;;  %v1510_v6 = vunpack.c.h.bf16 %v1534_v4  ;;  %v1521_v9 = vunpack.c.l.bf16 %v1537_v8  ;;  %1637 = vmatpush3.bf16.msra.mxu1 %v1882_v13 }
  0x1c   : > { %1597 = vmatpush3.bf16.msra.mxu0 %v1878_v22  ;;  %v1810_v3 = vpack.i.bf16 %v1506_v0, %v1505_v63  ;;  %v1522_v10 = vunpack.c.h.bf16 %v1537_v8  ;;  %1638 = vmatprep.subr.bf16.mxu1 %v1883_v14  ;;  %v510_v16 = vlaneseq  ;;  %v348_v19 = vunpack.c.l.bf16 %v347_v18 }
  0x1d   : > { %1719 = vset.pattern.permute.xlu1 %v1898_v2  ;;  %1715 = vperm.xlu0 %1692, %v1714_v23   ;;  %v1828_v7 = vpack.i.bf16 %v1510_v6, %v1509_v5 }
  0x1e   : > { %1721 = vperm.xlu1 %1719, %v1720_v26   ;;  %1598 = vmatprep.subr.bf16.mxu0 %v1879_v29  ;;  %v1856_v11 = vpack.i.bf16 %v1522_v10, %v1521_v9  ;;  %v511_v17 = vshrl.u32 %v510_v16, 7 }
  0x1f   : > { %1639 = vmatpush3.bf16.msra.mxu1 %v1883_v14 }
  0x20   : > { %1599 = vmatpush3.bf16.msra.mxu0 %v1879_v29  ;;  %v512_v20 = vsub.s32 0, %v511_v17  ;;  %v714_v21 = vsub.s32 1, %v511_v17 }
  0x21   : > { %1738 = vperm.xlu0 %1692, %v1737_v27   ;;  %1600 = vmatprep.subr.bf16.mxu0 %v1880_v33 }
  0x22   : > { %1725 = vset.pattern.permute.xlu1 %v1897_v1  ;;  %v2037_v22 = vrot.slane %v348_v19, %v512_v20 }
  0x23   : > { %1727 = vperm.xlu1 %1725, %v1720_v26  }
  0x24   : > { %1601 = vmatpush3.bf16.msra.mxu0 %v1880_v33 }
  0x25   : > { %1742 = vset.pattern.permute.xlu0 %v1897_v1 }
  0x26   : > { %1744 = vperm.xlu0 %1742, %v1714_v23  }
  0x27   : > { %1731 = vset.pattern.permute.xlu1 %v1898_v2 }
  0x28   : > { %1733 = vperm.xlu1 %1731, %v1732_v36  }
  0x2a   : > { %1766 = vperm.xlu0 %1742, %v1765_v37  }
  0x2c   : > { %1748 = vset.pattern.permute.xlu1 %v1897_v1 }
  0x2d   : > { %1750 = vperm.xlu1 %1748, %v1732_v36  }
  0x2e   : > { %1770 = vset.pattern.permute.xlu0 %v1898_v2 }
  0x2f   : > { %1772 = vperm.xlu0 %1770, %v1765_v37  }
  0x31   : > { %1755 = vperm.xlu1 %1748, %v1737_v27   ;;  %v2039_v27 = vrot.slane %v348_v19, %v714_v21 }
  0x33   : > { %1789 = vperm.xlu0 %1770, %v1788_v45  }
  0x35   : > { %1759 = vset.pattern.permute.xlu1 %v1898_v2 }
  0x36   : > { %1761 = vperm.xlu1 %1759, %v1760_v48  }
  0x37   : > { %1805 = vperm.xlu0 %1770, %v1804_v49  }
  0x3a   : > { %1776 = vset.pattern.permute.xlu1 %v1897_v1 }
  0x3b   : > { %1778 = vperm.xlu1 %1776, %v1760_v48   ;;  %1815 = vset.pattern.permute.xlu0 %v1897_v1 }
  0x3c   : > { %1817 = vperm.xlu0 %1815, %v1804_v49  }
  0x3f   : > { %1782 = vset.pattern.permute.xlu1 %v1898_v2 }
  0x40   : > { %1784 = vperm.xlu1 %1782, %v1783_v57   ;;  %1833 = vset.pattern.permute.xlu0 %v1898_v2 }
  0x41   : > { %1835 = vperm.xlu0 %1833, %v1834_v58  }
  0x44   : > { %1793 = vset.pattern.permute.xlu1 %v1897_v1 }
  0x45   : > { %1795 = vperm.xlu1 %1793, %v1783_v57   ;;  %1851 = vperm.xlu0 %1833, %v1850_v61  }
  0x49   : > { %1800 = vperm.xlu1 %1793, %v1788_v45   ;;  %1861 = vset.pattern.permute.xlu0 %v1897_v1 }
  0x4a   : > { %1863 = vperm.xlu0 %1861, %v1850_v61  }
  0x4d   : > { %1809 = vset.pattern.permute.xlu1 %v1898_v2 }
  0x4e   : > { %1811 = vperm.xlu1 %1809, %v1810_v3  }
  0x52   : > { %1821 = vset.pattern.permute.xlu1 %v1897_v1 }
  0x53   : > { %1823 = vperm.xlu1 %1821, %v1810_v3  }
  0x57   : > { %1827 = vset.pattern.permute.xlu1 %v1898_v2 }
  0x58   : > { %1829 = vperm.xlu1 %1827, %v1828_v7  }
  0x5c   : > { %1839 = vset.pattern.permute.xlu1 %v1897_v1 }
  0x5d   : > { %1841 = vperm.xlu1 %1839, %v1828_v7  }
  0x61   : > { %1846 = vperm.xlu1 %1839, %v1834_v58  }
  0x65   : > { %1855 = vset.pattern.permute.xlu1 %v1898_v2  ;;  %v1885_v2 = vld [vmem:[%s2300_s5 + $0x20] sm:$0xff]  }
  0x66   : > { %1857 = vperm.xlu1 %1855, %v1856_v11  }
  0x6a   : > { %1867 = vset.pattern.permute.xlu1 %v1897_v1  ;;  %v1884_v1 = vld [vmem:[%s2300_s5 + $0x18] sm:$0xff]  }
  0x6b   : > { %1869 = vperm.xlu1 %1867, %v1856_v11   ;;  %1640 = vmatprep.subr.bf16.mxu1 %v1884_v1 }
  0x6c   : > { %1641 = vmatpush3.bf16.msra.mxu1 %v1884_v1 }
  0x6d   : > { %1642 = vmatprep.subr.bf16.mxu1 %v1885_v2 }
  0x70   : > { %1643 = vmatpush3.bf16.msra.mxu1 %v1885_v2 }
  0x71   : > { %1644 = vmatprep.subr.bf16.mxu1 %v1886_v15 }
  0x74   : > { %1645 = vmatpush3.bf16.msra.mxu1 %v1886_v15 }
  0x94   : > { %v1706_v23 = vpop.permute.xlu1 %1705  ;;  %v1695_v24 = vpop.permute.xlu0 %1694 }
  0x95   : > { %v1697_v25 = vunpack.i.h.bf16 %v1695_v24  ;;  %v1696_v26 = vunpack.i.l.bf16 %v1695_v24  ;;  %v1708_v28 = vunpack.i.h.bf16 %v1706_v23  ;;  %v1707_v29 = vunpack.i.l.bf16 %v1706_v23 }
  0x97   : > { %v515_v30 = vmul.f32 %v1697_v25, %v2037_v22  ;;  %v514_v31 = vmul.f32 %v1696_v26, %v2037_v22  ;;  %v717_v39 = vmul.f32 %v1708_v28, %v2039_v27  ;;  %v716_v40 = vmul.f32 %v1707_v29, %v2039_v27 }
  0x98   : > { %v1711_v33 = vpop.permute.xlu1 %1710  ;;  %v1700_v34 = vpop.permute.xlu0 %1699 }
  0x99   : > { %v1713_v35 = vunpack.i.h.bf16 %v1711_v33  ;;  %v1712_v36 = vunpack.i.l.bf16 %v1711_v33  ;;  %v1702_v37 = vunpack.i.h.bf16 %v1700_v34  ;;  %v1701_v38 = vunpack.i.l.bf16 %v1700_v34 }
  0x9a   : > { %v552_v41 = vadd.f32 %v2046_v32, %v514_v31  ;;  %v553_v42 = vadd.f32 %v2046_v32, %v515_v30 }
  0x9b   : > { %v517_v43 = vmul.f32 %v1702_v37, %v2037_v22  ;;  %v516_v44 = vmul.f32 %v1701_v38, %v2037_v22  ;;  %v719_v45 = vmul.f32 %v1713_v35, %v2039_v27  ;;  %v718_v46 = vmul.f32 %v1712_v36, %v2039_v27 }
  0x9c   : > { %v1716_v47 = vpop.permute.xlu0 %1715  ;;  %v748_v48 = vadd.f32 %v716_v40, %v552_v41  ;;  %v749_v49 = vadd.f32 %v717_v39, %v553_v42 }
  0x9d   : > { %v555_v50 = vadd.f32 %v2046_v32, %v517_v43  ;;  %v554_v51 = vadd.f32 %v2046_v32, %v516_v44  ;;  %v1722_v52 = vpop.permute.xlu1 %1721  ;;  %v1718_v53 = vunpack.i.h.bf16 %v1716_v47  ;;  %v1717_v54 = vunpack.i.l.bf16 %v1716_v47 }
  0x9e   : > { %v1724_v55 = vunpack.i.h.bf16 %v1722_v52  ;;  %v1723_v56 = vunpack.i.l.bf16 %v1722_v52  ;;  %v780_v57 = vmax.f32 %v748_v48, 0.0  ;;  %v781_v58 = vmax.f32 %v749_v49, 0.0 }
  0x9f   : > { %v750_v59 = vadd.f32 %v718_v46, %v554_v51  ;;  %v751_v60 = vadd.f32 %v719_v45, %v555_v50  ;;  %v519_v3 = vmul.f32 %v1718_v53, %v2037_v22  ;;  %v518_v4 = vmul.f32 %v1717_v54, %v2037_v22 }
  0xa0   : > { %v1739_v61 = vpop.permute.xlu0 %1738  ;;  %v812_v62 = vpack.c.bf16 %v781_v58, %v780_v57  ;;  %v521_v63 = vmul.f32 %v1724_v55, %v2037_v22  ;;  %v520_v0 = vmul.f32 %v1723_v56, %v2037_v22 }
  0xa1   : > { %v782_v6 = vmax.f32 %v750_v59, 0.0  ;;  %v783_v7 = vmax.f32 %v751_v60, 0.0  ;;  %v557_v2 = vadd.f32 %v2046_v32, %v519_v3  ;;  %v556_v15 = vadd.f32 %v2046_v32, %v518_v4 }
  0xa2   : > { %1602 = vmatprep.mubr.bf16.mxu0 %v812_v62  ;;  %v1728_v5 = vpop.permute.xlu1 %1727  ;;  %v559_v11 = vadd.f32 %v2046_v32, %v521_v63  ;;  %v558_v12 = vadd.f32 %v2046_v32, %v520_v0  ;;  %v1741_v18 = vunpack.i.h.bf16 %v1739_v61  ;;  %v1740_v19 = vunpack.i.l.bf16 %v1739_v61 }
  0xa3   : > { %v1730_v8 = vunpack.i.h.bf16 %v1728_v5  ;;  %v1729_v9 = vunpack.i.l.bf16 %v1728_v5  ;;  %v813_v10 = vpack.c.bf16 %v783_v7, %v782_v6 }
  0xa4   : > { %v525_v37 = vmul.f32 %v1741_v18, %v2037_v22  ;;  %v524_v38 = vmul.f32 %v1740_v19, %v2037_v22 }
  0xa5   : > { %v723_v13 = vmul.f32 %v1730_v8, %v2039_v27  ;;  %v722_v14 = vmul.f32 %v1729_v9, %v2039_v27  ;;  %v1745_v1 = vpop.permute.xlu0 %1744  ;;  %1603 = vmatmul.mubr.bf16.vlgmr.msra.gmra.mrb[0].mxu0 %v813_v10 }
  0xa6   : > { %v1747_v16 = vunpack.i.h.bf16 %v1745_v1  ;;  %v1746_v17 = vunpack.i.l.bf16 %v1745_v1  ;;  %v563_v55 = vadd.f32 %v2046_v32, %v525_v37  ;;  %v562_v56 = vadd.f32 %v2046_v32, %v524_v38 }
  0xa7   : > { %v754_v20 = vadd.f32 %v722_v14, %v558_v12  ;;  %v755_v21 = vadd.f32 %v723_v13, %v559_v11  ;;  %v1734_v23 = vpop.permute.xlu1 %1733 }
  0xa8   : > { %v721_v24 = vmul.f32 %v1747_v16, %v2039_v27  ;;  %v720_v25 = vmul.f32 %v1746_v17, %v2039_v27  ;;  %v1736_v26 = vunpack.i.h.bf16 %v1734_v23  ;;  %v1735_v28 = vunpack.i.l.bf16 %v1734_v23 }
  0xa9   : > { %v786_v29 = vmax.f32 %v754_v20, 0.0  ;;  %v787_v30 = vmax.f32 %v755_v21, 0.0  ;;  %v1767_v31 = vpop.permute.xlu0 %1766 }
  0xaa   : > { %v752_v33 = vadd.f32 %v720_v25, %v556_v15  ;;  %v753_v34 = vadd.f32 %v721_v24, %v557_v2  ;;  %v523_v35 = vmul.f32 %v1736_v26, %v2037_v22  ;;  %v522_v36 = vmul.f32 %v1735_v28, %v2037_v22 }
  0xab   : > { %v815_v44 = vpack.c.bf16 %v787_v30, %v786_v29  ;;  %v1769_v45 = vunpack.i.h.bf16 %v1767_v31  ;;  %v1768_v49 = vunpack.i.l.bf16 %v1767_v31 }
  0xac   : > { %v1751_v39 = vpop.permute.xlu1 %1750  ;;  %v784_v40 = vmax.f32 %v752_v33, 0.0  ;;  %v785_v41 = vmax.f32 %v753_v34, 0.0  ;;  %v561_v46 = vadd.f32 %v2046_v32, %v523_v35  ;;  %v560_v47 = vadd.f32 %v2046_v32, %v522_v36 }
  0xad   : > { %v1753_v42 = vunpack.i.h.bf16 %v1751_v39  ;;  %v1752_v43 = vunpack.i.l.bf16 %v1751_v39  ;;  %v729_v62 = vmul.f32 %v1769_v45, %v2039_v27  ;;  %v728_v63 = vmul.f32 %v1768_v49, %v2039_v27 }
  0xae   : > { %v814_v48 = vpack.c.bf16 %v785_v41, %v784_v40  ;;  %v1773_v50 = vpop.permute.xlu0 %1772 }
  0xaf   : > { %v725_v51 = vmul.f32 %v1753_v42, %v2039_v27  ;;  %v724_v52 = vmul.f32 %v1752_v43, %v2039_v27  ;;  %v1775_v53 = vunpack.i.h.bf16 %v1773_v50  ;;  %v1774_v54 = vunpack.i.l.bf16 %v1773_v50 }
  0xb0   : > { %v1756_v57 = vpop.permute.xlu1 %1755  ;;  %1606 = vmatprep.mubr.bf16.mxu0 %v814_v48 }
  0xb1   : > { %v756_v58 = vadd.f32 %v724_v52, %v560_v47  ;;  %v757_v59 = vadd.f32 %v725_v51, %v561_v46  ;;  %v1758_v60 = vunpack.i.h.bf16 %v1756_v57  ;;  %v1757_v61 = vunpack.i.l.bf16 %v1756_v57  ;;  %1607 = vmatmul.mubr.bf16.gmra.mrb[4].mxu0 %v815_v44 }
  0xb2   : > { %v527_v0 = vmul.f32 %v1775_v53, %v2037_v22  ;;  %v526_v3 = vmul.f32 %v1774_v54, %v2037_v22  ;;  %v1790_v4 = vpop.permute.xlu0 %1789 }
  0xb3   : > { %v727_v5 = vmul.f32 %v1758_v60, %v2039_v27  ;;  %v726_v6 = vmul.f32 %v1757_v61, %v2039_v27  ;;  %v788_v7 = vmax.f32 %v756_v58, 0.0  ;;  %v789_v8 = vmax.f32 %v757_v59, 0.0 }
  0xb4   : > { %v565_v9 = vadd.f32 %v2046_v32, %v527_v0  ;;  %v564_v10 = vadd.f32 %v2046_v32, %v526_v3  ;;  %v1792_v39 = vunpack.i.h.bf16 %v1790_v4  ;;  %v1791_v40 = vunpack.i.l.bf16 %v1790_v4 }
  0xb5   : > { %v758_v11 = vadd.f32 %v726_v6, %v562_v56  ;;  %v759_v12 = vadd.f32 %v727_v5, %v563_v55  ;;  %v1762_v13 = vpop.permute.xlu1 %1761  ;;  %v816_v14 = vpack.c.bf16 %v789_v8, %v788_v7 }
  0xb6   : > { %v1764_v1 = vunpack.i.h.bf16 %v1762_v13  ;;  %v1763_v2 = vunpack.i.l.bf16 %v1762_v13  ;;  %v760_v17 = vadd.f32 %v728_v63, %v564_v10  ;;  %v761_v18 = vadd.f32 %v729_v62, %v565_v9  ;;  %v1806_v19 = vpop.permute.xlu0 %1805 }
  0xb7   : > { %1610 = vmatprep.mubr.bf16.mxu0 %v816_v14  ;;  %v790_v15 = vmax.f32 %v758_v11, 0.0  ;;  %v791_v16 = vmax.f32 %v759_v12, 0.0  ;;  %v1808_v28 = vunpack.i.h.bf16 %v1806_v19  ;;  %v1807_v33 = vunpack.i.l.bf16 %v1806_v19 }
  0xb8   : > { %v529_v20 = vmul.f32 %v1764_v1, %v2037_v22  ;;  %v528_v21 = vmul.f32 %v1763_v2, %v2037_v22  ;;  %v792_v24 = vmax.f32 %v760_v17, 0.0  ;;  %v793_v25 = vmax.f32 %v761_v18, 0.0 }
  0xb9   : > { %v817_v23 = vpack.c.bf16 %v791_v16, %v790_v15  ;;  %v535_v44 = vmul.f32 %v1808_v28, %v2037_v22  ;;  %v534_v45 = vmul.f32 %v1807_v33, %v2037_v22  ;;  %v533_v52 = vmul.f32 %v1792_v39, %v2037_v22 }
  0xba   : > { %v1779_v26 = vpop.permute.xlu1 %1778  ;;  %v818_v31 = vpack.c.bf16 %v793_v25, %v792_v24  ;;  %v567_v34 = vadd.f32 %v2046_v32, %v529_v20  ;;  %v566_v35 = vadd.f32 %v2046_v32, %v528_v21  ;;  %v532_v55 = vmul.f32 %v1791_v40, %v2037_v22 }
  0xbb   : > { %v1781_v29 = vunpack.i.h.bf16 %v1779_v26  ;;  %v1780_v30 = vunpack.i.l.bf16 %v1779_v26  ;;  %1611 = vmatmul.mubr.bf16.gmra.mrb[8].mxu0 %v817_v23  ;;  %v1818_v38 = vpop.permute.xlu0 %1817  ;;  %v573_v58 = vadd.f32 %v2046_v32, %v535_v44  ;;  %v572_v59 = vadd.f32 %v2046_v32, %v534_v45 }
  0xbc   : > { %1614 = vmatprep.mubr.bf16.mxu0 %v818_v31  ;;  %v1820_v48 = vunpack.i.h.bf16 %v1818_v38  ;;  %v1819_v49 = vunpack.i.l.bf16 %v1818_v38  ;;  %v571_v6 = vadd.f32 %v2046_v32, %v533_v52  ;;  %v570_v7 = vadd.f32 %v2046_v32, %v532_v55 }
  0xbd   : > { %v731_v36 = vmul.f32 %v1781_v29, %v2039_v27  ;;  %v730_v37 = vmul.f32 %v1780_v30, %v2039_v27 }
  0xbe   : > { %v737_v60 = vmul.f32 %v1820_v48, %v2039_v27  ;;  %v736_v61 = vmul.f32 %v1819_v49, %v2039_v27 }
  0xbf   : > { %v762_v41 = vadd.f32 %v730_v37, %v566_v35  ;;  %v763_v42 = vadd.f32 %v731_v36, %v567_v34  ;;  %v1785_v43 = vpop.permute.xlu1 %1784 }
  0xc0   : > { %v1787_v46 = vunpack.i.h.bf16 %v1785_v43  ;;  %v1786_v47 = vunpack.i.l.bf16 %v1785_v43  ;;  %v768_v9 = vadd.f32 %v736_v61, %v572_v59  ;;  %v769_v10 = vadd.f32 %v737_v60, %v573_v58  ;;  %v1836_v1 = vpop.permute.xlu0 %1835 }
  0xc1   : > { %v794_v50 = vmax.f32 %v762_v41, 0.0  ;;  %v795_v51 = vmax.f32 %v763_v42, 0.0 }
  0xc2   : > { %v531_v53 = vmul.f32 %v1787_v46, %v2037_v22  ;;  %v530_v54 = vmul.f32 %v1786_v47, %v2037_v22  ;;  %v800_v18 = vmax.f32 %v768_v9, 0.0  ;;  %v801_v19 = vmax.f32 %v769_v10, 0.0 }
  0xc3   : > { %v819_v56 = vpack.c.bf16 %v795_v51, %v794_v50  ;;  %v1838_v46 = vunpack.i.h.bf16 %v1836_v1  ;;  %v1837_v47 = vunpack.i.l.bf16 %v1836_v1 }
  0xc4   : > { %v1796_v57 = vpop.permute.xlu1 %1795  ;;  %v569_v0 = vadd.f32 %v2046_v32, %v531_v53  ;;  %v568_v3 = vadd.f32 %v2046_v32, %v530_v54  ;;  %v1852_v30 = vpop.permute.xlu0 %1851  ;;  %v822_v31 = vpack.c.bf16 %v801_v19, %v800_v18 }
  0xc5   : > { %v1798_v62 = vunpack.i.h.bf16 %v1796_v57  ;;  %v1797_v63 = vunpack.i.l.bf16 %v1796_v57  ;;  %1615 = vmatmul.mubr.bf16.gmra.mrb[12].mxu0 %v819_v56  ;;  %v1854_v39 = vunpack.i.h.bf16 %v1852_v30  ;;  %v1853_v40 = vunpack.i.l.bf16 %v1852_v30 }
  0xc6   : > { %v541_v59 = vmul.f32 %v1838_v46, %v2037_v22 }
  0xc7   : > { %v733_v4 = vmul.f32 %v1798_v62, %v2039_v27  ;;  %v732_v5 = vmul.f32 %v1797_v63, %v2039_v27  ;;  %v543_v51 = vmul.f32 %v1854_v39, %v2037_v22  ;;  %v542_v52 = vmul.f32 %v1853_v40, %v2037_v22 }
  0xc8   : > { %v1801_v8 = vpop.permute.xlu1 %1800  ;;  %v540_v62 = vmul.f32 %v1837_v47, %v2037_v22 }
  0xc9   : > { %v764_v11 = vadd.f32 %v732_v5, %v568_v3  ;;  %v765_v12 = vadd.f32 %v733_v4, %v569_v0  ;;  %v1803_v13 = vunpack.i.h.bf16 %v1801_v8  ;;  %v1802_v14 = vunpack.i.l.bf16 %v1801_v8  ;;  %v1864_v45 = vpop.permute.xlu0 %1863 }
  0xca   : > { %v1866_v55 = vunpack.i.h.bf16 %v1864_v45  ;;  %v1865_v56 = vunpack.i.l.bf16 %v1864_v45  ;;  %v581_v3 = vadd.f32 %v2046_v32, %v543_v51  ;;  %v580_v4 = vadd.f32 %v2046_v32, %v542_v52 }
  0xcb   : > { %v735_v2 = vmul.f32 %v1803_v13, %v2039_v27  ;;  %v734_v15 = vmul.f32 %v1802_v14, %v2039_v27  ;;  %v796_v16 = vmax.f32 %v764_v11, 0.0  ;;  %v797_v17 = vmax.f32 %v765_v12, 0.0 }
  0xcc   : > { %v745_v5 = vmul.f32 %v1866_v55, %v2039_v27  ;;  %v579_v13 = vadd.f32 %v2046_v32, %v541_v59  ;;  %v578_v14 = vadd.f32 %v2046_v32, %v540_v62 }
  0xcd   : > { %v766_v20 = vadd.f32 %v734_v15, %v570_v7  ;;  %v767_v21 = vadd.f32 %v735_v2, %v571_v6  ;;  %v1812_v23 = vpop.permute.xlu1 %1811  ;;  %v820_v24 = vpack.c.bf16 %v797_v17, %v796_v16  ;;  %v744_v6 = vmul.f32 %v1865_v56, %v2039_v27 }
  0xce   : > { %v1814_v25 = vunpack.i.h.bf16 %v1812_v23  ;;  %v1813_v26 = vunpack.i.l.bf16 %v1812_v23  ;;  %v777_v15 = vadd.f32 %v745_v5, %v581_v3 }
  0xcf   : > { %1618 = vmatprep.mubr.bf16.mxu0 %v820_v24  ;;  %v798_v28 = vmax.f32 %v766_v20, 0.0  ;;  %v799_v29 = vmax.f32 %v767_v21, 0.0  ;;  %v776_v2 = vadd.f32 %v744_v6, %v580_v4 }
  0xd0   : > { %v537_v33 = vmul.f32 %v1814_v25, %v2037_v22  ;;  %v536_v34 = vmul.f32 %v1813_v26, %v2037_v22  ;;  %v809_v26 = vmax.f32 %v777_v15, 0.0 }
  0xd1   : > { %v821_v35 = vpack.c.bf16 %v799_v29, %v798_v28  ;;  %v808_v25 = vmax.f32 %v776_v2, 0.0 }
  0xd2   : > { %v1824_v36 = vpop.permute.xlu1 %1823  ;;  %v575_v41 = vadd.f32 %v2046_v32, %v537_v33  ;;  %v574_v42 = vadd.f32 %v2046_v32, %v536_v34 }
  0xd3   : > { %v1826_v37 = vunpack.i.h.bf16 %v1824_v36  ;;  %v1825_v38 = vunpack.i.l.bf16 %v1824_v36  ;;  %1619 = vmatmul.mubr.bf16.gmra.mrb[16].mxu0 %v821_v35 }
  0xd4   : > { %1622 = vmatprep.mubr.bf16.mxu0 %v822_v31 }
  0xd5   : > { %v739_v43 = vmul.f32 %v1826_v37, %v2039_v27  ;;  %v738_v44 = vmul.f32 %v1825_v38, %v2039_v27  ;;  %v826_v37 = vpack.c.bf16 %v809_v26, %v808_v25 }
  0xd7   : > { %v770_v48 = vadd.f32 %v738_v44, %v574_v42  ;;  %v771_v49 = vadd.f32 %v739_v43, %v575_v41  ;;  %v1830_v50 = vpop.permute.xlu1 %1829 }
  0xd8   : > { %v1832_v53 = vunpack.i.h.bf16 %v1830_v50  ;;  %v1831_v54 = vunpack.i.l.bf16 %v1830_v50 }
  0xd9   : > { %v802_v57 = vmax.f32 %v770_v48, 0.0  ;;  %v803_v58 = vmax.f32 %v771_v49, 0.0 }
  0xda   : > { %v539_v60 = vmul.f32 %v1832_v53, %v2037_v22  ;;  %v538_v61 = vmul.f32 %v1831_v54, %v2037_v22 }
  0xdb   : > { %v823_v63 = vpack.c.bf16 %v803_v58, %v802_v57 }
  0xdc   : > { %v1842_v0 = vpop.permute.xlu1 %1841  ;;  %v577_v9 = vadd.f32 %v2046_v32, %v539_v60  ;;  %v576_v10 = vadd.f32 %v2046_v32, %v538_v61 }
  0xdd   : > { %v1844_v7 = vunpack.i.h.bf16 %v1842_v0  ;;  %v1843_v8 = vunpack.i.l.bf16 %v1842_v0  ;;  %1623 = vmatmul.mubr.bf16.gmra.mrb[20].mxu0 %v823_v63 }
  0xdf   : > { %v741_v11 = vmul.f32 %v1844_v7, %v2039_v27  ;;  %v740_v12 = vmul.f32 %v1843_v8, %v2039_v27 }
  0xe0   : > { %v1847_v1 = vpop.permute.xlu1 %1846 }
  0xe1   : > { %v772_v16 = vadd.f32 %v740_v12, %v576_v10  ;;  %v773_v17 = vadd.f32 %v741_v11, %v577_v9  ;;  %v1849_v18 = vunpack.i.h.bf16 %v1847_v1  ;;  %v1848_v19 = vunpack.i.l.bf16 %v1847_v1 }
  0xe3   : > { %v743_v20 = vmul.f32 %v1849_v18, %v2039_v27  ;;  %v742_v21 = vmul.f32 %v1848_v19, %v2039_v27  ;;  %v804_v23 = vmax.f32 %v772_v16, 0.0  ;;  %v805_v24 = vmax.f32 %v773_v17, 0.0 }
  0xe5   : > { %v774_v28 = vadd.f32 %v742_v21, %v578_v14  ;;  %v775_v29 = vadd.f32 %v743_v20, %v579_v13  ;;  %v1858_v30 = vpop.permute.xlu1 %1857  ;;  %v824_v31 = vpack.c.bf16 %v805_v24, %v804_v23 }
  0xe6   : > { %v1860_v33 = vunpack.i.h.bf16 %v1858_v30  ;;  %v1859_v34 = vunpack.i.l.bf16 %v1858_v30 }
  0xe7   : > { %1626 = vmatprep.mubr.bf16.mxu0 %v824_v31  ;;  %v806_v35 = vmax.f32 %v774_v28, 0.0  ;;  %v807_v36 = vmax.f32 %v775_v29, 0.0 }
  0xe8   : > { %v545_v38 = vmul.f32 %v1860_v33, %v2037_v22  ;;  %v544_v39 = vmul.f32 %v1859_v34, %v2037_v22  ;;  %v1887_v22 = vld [vmem:[%s2300_s5 + $0x30] sm:$0xff]  }
  0xe9   : > { %v825_v40 = vpack.c.bf16 %v807_v36, %v806_v35  ;;  %1646 = vmatprep.subr.bf16.mxu1 %v1887_v22 }
  0xea   : > { %v1870_v41 = vpop.permute.xlu1 %1869  ;;  %v583_v44 = vadd.f32 %v2046_v32, %v545_v38  ;;  %v582_v45 = vadd.f32 %v2046_v32, %v544_v39  ;;  %1647 = vmatpush3.bf16.msra.mxu1 %v1887_v22  ;;  %v1888_v32 = vld [vmem:[%s2300_s5 + $0x38] sm:$0xff]  }
  0xeb   : > { %v1872_v42 = vunpack.i.h.bf16 %v1870_v41  ;;  %v1871_v43 = vunpack.i.l.bf16 %v1870_v41  ;;  %1627 = vmatmul.mubr.bf16.gmra.mrb[24].mxu0 %v825_v40  ;;  %1648 = vmatprep.subr.bf16.mxu1 %v1888_v32 }
  0xec   : > { %1630 = vmatprep.mubr.bf16.mxu0 %v826_v37 }
  0xed   : > { %v747_v46 = vmul.f32 %v1872_v42, %v2039_v27  ;;  %v746_v47 = vmul.f32 %v1871_v43, %v2039_v27  ;;  %v2151_v27 = vld [vmem:[%s2299_s4] ss:$0 sm:$0xff] }
  0xee   : > { %1649 = vmatpush3.bf16.msra.mxu1 %v1888_v32 }
  0xef   : > { %v778_v48 = vadd.f32 %v746_v47, %v582_v45  ;;  %v779_v49 = vadd.f32 %v747_v46, %v583_v44 }
  0xf1   : > { %v810_v50 = vmax.f32 %v778_v48, 0.0  ;;  %v811_v51 = vmax.f32 %v779_v49, 0.0 }
  0xf3   : > { %v827_v52 = vpack.c.bf16 %v811_v51, %v810_v50 }
  0xf5   : > { %1631 = vmatmul.mubr.bf16.gmra.mrb[28].mxu0 %v827_v52 }
 0x178   : > { %v1604_v53 = vpop.f32.mrb[0].mxu0 }
 0x179   : > { %v942_v54 = vadd.f32 %v1604_v53, %v2151_v27  ;;  %v933_v55 = vpop.f32.mrb[1].mxu0 }
 0x17a   : > { %v934_v56 = vadd.f32 %v2151_v27, %v933_v55  ;;  %v1605_v57 = vpop.f32.mrb[2].mxu0 }
 0x17b   : > { %v945_v58 = vadd.f32 %v1605_v57, %v2151_v27  ;;  %v936_v59 = vpop.f32.mrb[3].mxu0  ;;  %v1062_v61 = vmax.f32 %v942_v54, 0.0 }
 0x17c   : > { %v937_v60 = vadd.f32 %v2151_v27, %v936_v59  ;;  %v1060_v63 = vmax.f32 %v934_v56, 0.0 }
 0x17d   : > { %v1063_v62 = vmax.f32 %v945_v58, 0.0 }
 0x17e   : > { %v1061_v0 = vmax.f32 %v937_v60, 0.0 }
 0x17f   : > { %v1093_v3 = vpack.c.bf16 %v1063_v62, %v1062_v61 }
 0x180   : > { %v1092_v4 = vpack.c.bf16 %v1061_v0, %v1060_v63 }
 0x182   : > { %1650 = vmatprep.mubr.bf16.mxu1 %v1092_v4 }
 0x183   : > { %1651 = vmatmul.mubr.bf16.vlgmr.msra.gmra.mrb[0].mxu1 %v1093_v3 }
 0x184   : > { %v1608_v5 = vpop.f32.mrb[4].mxu0 }
 0x185   : > { %v958_v6 = vadd.f32 %v1608_v5, %v2151_v27  ;;  %v949_v7 = vpop.f32.mrb[5].mxu0 }
 0x186   : > { %v950_v8 = vadd.f32 %v2151_v27, %v949_v7  ;;  %v1609_v9 = vpop.f32.mrb[6].mxu0 }
 0x187   : > { %v961_v10 = vadd.f32 %v1609_v9, %v2151_v27  ;;  %v952_v11 = vpop.f32.mrb[7].mxu0  ;;  %v1066_v13 = vmax.f32 %v958_v6, 0.0 }
 0x188   : > { %v953_v12 = vadd.f32 %v2151_v27, %v952_v11  ;;  %v1064_v1 = vmax.f32 %v950_v8, 0.0 }
 0x189   : > { %v1067_v14 = vmax.f32 %v961_v10, 0.0 }
 0x18a   : > { %v1065_v2 = vmax.f32 %v953_v12, 0.0 }
 0x18b   : > { %v1095_v15 = vpack.c.bf16 %v1067_v14, %v1066_v13 }
 0x18c   : > { %v1094_v16 = vpack.c.bf16 %v1065_v2, %v1064_v1 }
 0x18e   : > { %v1612_v17 = vpop.f32.mrb[8].mxu0  ;;  %1654 = vmatprep.mubr.bf16.mxu1 %v1094_v16 }
 0x18f   : > { %v974_v18 = vadd.f32 %v1612_v17, %v2151_v27  ;;  %v965_v19 = vpop.f32.mrb[9].mxu0  ;;  %1655 = vmatmul.mubr.bf16.gmra.mrb[4].mxu1 %v1095_v15 }
 0x190   : > { %v966_v20 = vadd.f32 %v2151_v27, %v965_v19  ;;  %v1613_v21 = vpop.f32.mrb[10].mxu0 }
 0x191   : > { %v977_v23 = vadd.f32 %v1613_v21, %v2151_v27  ;;  %v968_v24 = vpop.f32.mrb[11].mxu0  ;;  %v1070_v26 = vmax.f32 %v974_v18, 0.0 }
 0x192   : > { %v969_v25 = vadd.f32 %v2151_v27, %v968_v24  ;;  %v1068_v29 = vmax.f32 %v966_v20, 0.0 }
 0x193   : > { %v1071_v28 = vmax.f32 %v977_v23, 0.0 }
 0x194   : > { %v1069_v30 = vmax.f32 %v969_v25, 0.0 }
 0x195   : > { %v1097_v31 = vpack.c.bf16 %v1071_v28, %v1070_v26 }
 0x196   : > { %v1096_v33 = vpack.c.bf16 %v1069_v30, %v1068_v29 }
 0x198   : > { %v1616_v34 = vpop.f32.mrb[12].mxu0  ;;  %1658 = vmatprep.mubr.bf16.mxu1 %v1096_v33 }
 0x199   : > { %v990_v35 = vadd.f32 %v1616_v34, %v2151_v27  ;;  %v981_v36 = vpop.f32.mrb[13].mxu0  ;;  %1659 = vmatmul.mubr.bf16.gmra.mrb[8].mxu1 %v1097_v31 }
 0x19a   : > { %v982_v37 = vadd.f32 %v2151_v27, %v981_v36  ;;  %v1617_v38 = vpop.f32.mrb[14].mxu0 }
 0x19b   : > { %v993_v39 = vadd.f32 %v1617_v38, %v2151_v27  ;;  %v984_v40 = vpop.f32.mrb[15].mxu0  ;;  %v1074_v42 = vmax.f32 %v990_v35, 0.0 }
 0x19c   : > { %v985_v41 = vadd.f32 %v2151_v27, %v984_v40  ;;  %v1072_v44 = vmax.f32 %v982_v37, 0.0 }
 0x19d   : > { %v1075_v43 = vmax.f32 %v993_v39, 0.0 }
 0x19e   : > { %v1073_v45 = vmax.f32 %v985_v41, 0.0  ;;  %v2189_v41 = vld [vmem:[%s2301_s6] ss:$0 sm:$0xff] }
 0x19f   : > { %v1099_v46 = vpack.c.bf16 %v1075_v43, %v1074_v42 }
 0x1a0   : > { %v1098_v47 = vpack.c.bf16 %v1073_v45, %v1072_v44 }
 0x1a2   : > { %1662 = vmatprep.mubr.bf16.mxu1 %v1098_v47 }
 0x1a3   : > { %1663 = vmatmul.mubr.bf16.gmra.mrb[12].mxu1 %v1099_v46 }
 0x1a6   : > { %v1620_v48 = vpop.f32.mrb[16].mxu0 }
 0x1a7   : > { %v1006_v49 = vadd.f32 %v1620_v48, %v2151_v27  ;;  %v997_v50 = vpop.f32.mrb[17].mxu0 }
 0x1a8   : > { %v998_v51 = vadd.f32 %v2151_v27, %v997_v50  ;;  %v1621_v52 = vpop.f32.mrb[18].mxu0 }
 0x1a9   : > { %v1009_v22 = vadd.f32 %v1621_v52, %v2151_v27  ;;  %v1000_v32 = vpop.f32.mrb[19].mxu0  ;;  %v1078_v54 = vmax.f32 %v1006_v49, 0.0 }
 0x1aa   : > { %v1001_v53 = vadd.f32 %v2151_v27, %v1000_v32  ;;  %v1076_v56 = vmax.f32 %v998_v51, 0.0 }
 0x1ab   : > { %v1079_v55 = vmax.f32 %v1009_v22, 0.0 }
 0x1ac   : > { %v1077_v57 = vmax.f32 %v1001_v53, 0.0 }
 0x1ad   : > { %v1101_v58 = vpack.c.bf16 %v1079_v55, %v1078_v54 }
 0x1ae   : > { %v1100_v59 = vpack.c.bf16 %v1077_v57, %v1076_v56 }
 0x1b0   : > { %v1624_v60 = vpop.f32.mrb[20].mxu0  ;;  %1666 = vmatprep.mubr.bf16.mxu1 %v1100_v59 }
 0x1b1   : > { %v1022_v61 = vadd.f32 %v1624_v60, %v2151_v27  ;;  %v1013_v62 = vpop.f32.mrb[21].mxu0  ;;  %1667 = vmatmul.mubr.bf16.gmra.mrb[16].mxu1 %v1101_v58 }
 0x1b2   : > { %v1014_v63 = vadd.f32 %v2151_v27, %v1013_v62  ;;  %v1625_v0 = vpop.f32.mrb[22].mxu0 }
 0x1b3   : > { %v1025_v3 = vadd.f32 %v1625_v0, %v2151_v27  ;;  %v1016_v4 = vpop.f32.mrb[23].mxu0  ;;  %v1082_v6 = vmax.f32 %v1022_v61, 0.0 }
 0x1b4   : > { %v1017_v5 = vadd.f32 %v2151_v27, %v1016_v4  ;;  %v1080_v8 = vmax.f32 %v1014_v63, 0.0 }
 0x1b5   : > { %v1083_v7 = vmax.f32 %v1025_v3, 0.0 }
 0x1b6   : > { %v1081_v9 = vmax.f32 %v1017_v5, 0.0 }
 0x1b7   : > { %v1103_v10 = vpack.c.bf16 %v1083_v7, %v1082_v6 }
 0x1b8   : > { %v1102_v11 = vpack.c.bf16 %v1081_v9, %v1080_v8 }
 0x1ba   : > { %1670 = vmatprep.mubr.bf16.mxu1 %v1102_v11 }
 0x1bb   : > { %1671 = vmatmul.mubr.bf16.gmra.mrb[20].mxu1 %v1103_v10 }
 0x1be   : > { %v1628_v12 = vpop.f32.mrb[24].mxu0 }
 0x1bf   : > { %v1038_v13 = vadd.f32 %v1628_v12, %v2151_v27  ;;  %v1029_v14 = vpop.f32.mrb[25].mxu0 }
 0x1c0   : > { %v1030_v1 = vadd.f32 %v2151_v27, %v1029_v14  ;;  %v1629_v2 = vpop.f32.mrb[26].mxu0 }
 0x1c1   : > { %v1041_v15 = vadd.f32 %v1629_v2, %v2151_v27  ;;  %v1032_v16 = vpop.f32.mrb[27].mxu0  ;;  %v1086_v18 = vmax.f32 %v1038_v13, 0.0 }
 0x1c2   : > { %v1033_v17 = vadd.f32 %v2151_v27, %v1032_v16  ;;  %v1084_v20 = vmax.f32 %v1030_v1, 0.0 }
 0x1c3   : > { %v1087_v19 = vmax.f32 %v1041_v15, 0.0 }
 0x1c4   : > { %v1085_v21 = vmax.f32 %v1033_v17, 0.0 }
 0x1c5   : > { %v1105_v23 = vpack.c.bf16 %v1087_v19, %v1086_v18 }
 0x1c6   : > { %v1104_v24 = vpack.c.bf16 %v1085_v21, %v1084_v20 }
 0x1c8   : > { %v1632_v25 = vpop.f32.mrb[28].mxu0  ;;  %1674 = vmatprep.mubr.bf16.mxu1 %v1104_v24 }
 0x1c9   : > { %v1054_v26 = vadd.f32 %v1632_v25, %v2151_v27  ;;  %v1045_v28 = vpop.f32.mrb[29].mxu0  ;;  %1675 = vmatmul.mubr.bf16.gmra.mrb[24].mxu1 %v1105_v23 }
 0x1ca   : > { %v1046_v29 = vadd.f32 %v2151_v27, %v1045_v28  ;;  %v1633_v30 = vpop.f32.mrb[30].mxu0 }
 0x1cb   : > { %v1057_v31 = vadd.f32 %v1633_v30, %v2151_v27  ;;  %v1048_v33 = vpop.f32.mrb[31].mxu0  ;;  %v1090_v35 = vmax.f32 %v1054_v26, 0.0 }
 0x1cc   : > { %v1049_v34 = vadd.f32 %v2151_v27, %v1048_v33  ;;  %v1088_v37 = vmax.f32 %v1046_v29, 0.0 }
 0x1cd   : > { %v1091_v36 = vmax.f32 %v1057_v31, 0.0 }
 0x1ce   : > { %v1089_v38 = vmax.f32 %v1049_v34, 0.0 }
 0x1cf   : > { %v1107_v39 = vpack.c.bf16 %v1091_v36, %v1090_v35 }
 0x1d0   : > { %v1106_v40 = vpack.c.bf16 %v1089_v38, %v1088_v37 }
 0x1d2   : > { %1678 = vmatprep.mubr.bf16.mxu1 %v1106_v40 }
 0x1d3   : > { %1679 = vmatmul.mubr.bf16.gmra.mrb[28].mxu1 %v1107_v39 }
 0x256   : > { %v1652_v27 = vpop.f32.mrb[0].mxu1 }
 0x257   : > { %v1222_v42 = vadd.f32 %v1652_v27, %v2189_v41  ;;  %v1213_v43 = vpop.f32.mrb[1].mxu1 }
 0x258   : > { %v1214_v44 = vadd.f32 %v2189_v41, %v1213_v43  ;;  %v1653_v45 = vpop.f32.mrb[2].mxu1 }
 0x259   : > { %1343 = vst.msk [vmem:[%s2194_s9 + $0x10] sm:$0xff] %vm1340_vm0, %v1222_v42  ;;  %v1225_v46 = vadd.f32 %v1653_v45, %v2189_v41  ;;  %v1216_v47 = vpop.f32.mrb[3].mxu1 }
 0x25a   : > { %1341 = vst.msk [vmem:[%s2194_s9] sm:$0xff] %vm1340_vm0, %v1214_v44  ;;  %v1217_v48 = vadd.f32 %v2189_v41, %v1216_v47 }
 0x25b   : > { %1344 = vst.msk [vmem:[%s2194_s9 + $0x18] sm:$0xff] %vm1340_vm0, %v1225_v46 }
 0x25c   : > { %1342 = vst.msk [vmem:[%s2194_s9 + $0x8] sm:$0xff] %vm1340_vm0, %v1217_v48 }
 0x262   : > { %v1656_v49 = vpop.f32.mrb[4].mxu1 }
 0x263   : > { %v1238_v50 = vadd.f32 %v1656_v49, %v2189_v41  ;;  %v1229_v51 = vpop.f32.mrb[5].mxu1 }
 0x264   : > { %v1230_v52 = vadd.f32 %v2189_v41, %v1229_v51  ;;  %v1657_v22 = vpop.f32.mrb[6].mxu1 }
 0x265   : > { %1347 = vst.msk [vmem:[%s2194_s9 + $0x30] sm:$0xff] %vm1340_vm0, %v1238_v50  ;;  %v1241_v32 = vadd.f32 %v1657_v22, %v2189_v41  ;;  %v1232_v53 = vpop.f32.mrb[7].mxu1 }
 0x266   : > { %1345 = vst.msk [vmem:[%s2194_s9 + $0x20] sm:$0xff] %vm1340_vm0, %v1230_v52  ;;  %v1233_v54 = vadd.f32 %v2189_v41, %v1232_v53 }
 0x267   : > { %1348 = vst.msk [vmem:[%s2194_s9 + $0x38] sm:$0xff] %vm1340_vm0, %v1241_v32 }
 0x268   : > { %1346 = vst.msk [vmem:[%s2194_s9 + $0x28] sm:$0xff] %vm1340_vm0, %v1233_v54 }
 0x26c   : > { %v1660_v55 = vpop.f32.mrb[8].mxu1 }
 0x26d   : > { %v1254_v56 = vadd.f32 %v1660_v55, %v2189_v41  ;;  %v1245_v57 = vpop.f32.mrb[9].mxu1 }
 0x26e   : > { %v1246_v58 = vadd.f32 %v2189_v41, %v1245_v57  ;;  %v1661_v59 = vpop.f32.mrb[10].mxu1 }
 0x26f   : > { %1351 = vst.msk [vmem:[%s2194_s9 + $0x50] sm:$0xff] %vm1340_vm0, %v1254_v56  ;;  %v1257_v60 = vadd.f32 %v1661_v59, %v2189_v41  ;;  %v1248_v61 = vpop.f32.mrb[11].mxu1 }
 0x270   : > { %1349 = vst.msk [vmem:[%s2194_s9 + $0x40] sm:$0xff] %vm1340_vm0, %v1246_v58  ;;  %v1249_v62 = vadd.f32 %v2189_v41, %v1248_v61 }
 0x271   : > { %1352 = vst.msk [vmem:[%s2194_s9 + $0x58] sm:$0xff] %vm1340_vm0, %v1257_v60 }
 0x272   : > { %1350 = vst.msk [vmem:[%s2194_s9 + $0x48] sm:$0xff] %vm1340_vm0, %v1249_v62 }
 0x276   : > { %v1664_v63 = vpop.f32.mrb[12].mxu1 }
 0x277   : > { %v1270_v0 = vadd.f32 %v1664_v63, %v2189_v41  ;;  %v1261_v3 = vpop.f32.mrb[13].mxu1 }
 0x278   : > { %v1262_v4 = vadd.f32 %v2189_v41, %v1261_v3  ;;  %v1665_v5 = vpop.f32.mrb[14].mxu1 }
 0x279   : > { %1355 = vst.msk [vmem:[%s2194_s9 + $0x70] sm:$0xff] %vm1340_vm0, %v1270_v0  ;;  %v1273_v6 = vadd.f32 %v1665_v5, %v2189_v41  ;;  %v1264_v7 = vpop.f32.mrb[15].mxu1 }
 0x27a   : > { %1353 = vst.msk [vmem:[%s2194_s9 + $0x60] sm:$0xff] %vm1340_vm0, %v1262_v4  ;;  %v1265_v8 = vadd.f32 %v2189_v41, %v1264_v7 }
 0x27b   : > { %1356 = vst.msk [vmem:[%s2194_s9 + $0x78] sm:$0xff] %vm1340_vm0, %v1273_v6 }
 0x27c   : > { %1354 = vst.msk [vmem:[%s2194_s9 + $0x68] sm:$0xff] %vm1340_vm0, %v1265_v8 }
 0x284   : > { %v1668_v9 = vpop.f32.mrb[16].mxu1 }
 0x285   : > { %v1286_v10 = vadd.f32 %v1668_v9, %v2189_v41  ;;  %v1277_v11 = vpop.f32.mrb[17].mxu1 }
 0x286   : > { %v1278_v12 = vadd.f32 %v2189_v41, %v1277_v11  ;;  %v1669_v13 = vpop.f32.mrb[18].mxu1 }
 0x287   : > { %1359 = vst.msk [vmem:[%s2194_s9 + $0x90] sm:$0xff] %vm1340_vm0, %v1286_v10  ;;  %v1289_v14 = vadd.f32 %v1669_v13, %v2189_v41  ;;  %v1280_v1 = vpop.f32.mrb[19].mxu1 }
 0x288   : > { %1357 = vst.msk [vmem:[%s2194_s9 + $0x80] sm:$0xff] %vm1340_vm0, %v1278_v12  ;;  %v1281_v2 = vadd.f32 %v2189_v41, %v1280_v1 }
 0x289   : > { %1360 = vst.msk [vmem:[%s2194_s9 + $0x98] sm:$0xff] %vm1340_vm0, %v1289_v14 }
 0x28a   : > { %1358 = vst.msk [vmem:[%s2194_s9 + $0x88] sm:$0xff] %vm1340_vm0, %v1281_v2 }
 0x28e   : > { %v1672_v15 = vpop.f32.mrb[20].mxu1 }
 0x28f   : > { %v1302_v16 = vadd.f32 %v1672_v15, %v2189_v41  ;;  %v1293_v17 = vpop.f32.mrb[21].mxu1 }
 0x290   : > { %v1294_v18 = vadd.f32 %v2189_v41, %v1293_v17  ;;  %v1673_v19 = vpop.f32.mrb[22].mxu1 }
 0x291   : > { %1363 = vst.msk [vmem:[%s2194_s9 + $0xb0] sm:$0xff] %vm1340_vm0, %v1302_v16  ;;  %v1305_v20 = vadd.f32 %v1673_v19, %v2189_v41  ;;  %v1296_v21 = vpop.f32.mrb[23].mxu1 }
 0x292   : > { %1361 = vst.msk [vmem:[%s2194_s9 + $0xa0] sm:$0xff] %vm1340_vm0, %v1294_v18  ;;  %v1297_v23 = vadd.f32 %v2189_v41, %v1296_v21 }
 0x293   : > { %1364 = vst.msk [vmem:[%s2194_s9 + $0xb8] sm:$0xff] %vm1340_vm0, %v1305_v20 }
 0x294   : > { %1362 = vst.msk [vmem:[%s2194_s9 + $0xa8] sm:$0xff] %vm1340_vm0, %v1297_v23 }
 0x29c   : > { %v1676_v24 = vpop.f32.mrb[24].mxu1 }
 0x29d   : > { %v1318_v25 = vadd.f32 %v1676_v24, %v2189_v41  ;;  %v1309_v26 = vpop.f32.mrb[25].mxu1 }
 0x29e   : > { %v1310_v28 = vadd.f32 %v2189_v41, %v1309_v26  ;;  %v1677_v29 = vpop.f32.mrb[26].mxu1 }
 0x29f   : > { %1367 = vst.msk [vmem:[%s2194_s9 + $0xd0] sm:$0xff] %vm1340_vm0, %v1318_v25  ;;  %v1321_v30 = vadd.f32 %v1677_v29, %v2189_v41  ;;  %v1312_v31 = vpop.f32.mrb[27].mxu1 }
 0x2a0   : > { %1365 = vst.msk [vmem:[%s2194_s9 + $0xc0] sm:$0xff] %vm1340_vm0, %v1310_v28  ;;  %v1313_v33 = vadd.f32 %v2189_v41, %v1312_v31 }
 0x2a1   : > { %1368 = vst.msk [vmem:[%s2194_s9 + $0xd8] sm:$0xff] %vm1340_vm0, %v1321_v30 }
 0x2a2   : > { %1366 = vst.msk [vmem:[%s2194_s9 + $0xc8] sm:$0xff] %vm1340_vm0, %v1313_v33 }
 0x2a6   : > { %v1680_v34 = vpop.f32.mrb[28].mxu1 }
 0x2a7   : > { %v1334_v35 = vadd.f32 %v1680_v34, %v2189_v41  ;;  %v1325_v36 = vpop.f32.mrb[29].mxu1 }
 0x2a8   : > { %v1326_v37 = vadd.f32 %v2189_v41, %v1325_v36  ;;  %v1681_v38 = vpop.f32.mrb[30].mxu1 }
 0x2a9   : > { %1371 = vst.msk [vmem:[%s2194_s9 + $0xf0] sm:$0xff] %vm1340_vm0, %v1334_v35  ;;  %v1337_v39 = vadd.f32 %v1681_v38, %v2189_v41  ;;  %v1328_v40 = vpop.f32.mrb[31].mxu1 }
 0x2aa   : > { %1369 = vst.msk [vmem:[%s2194_s9 + $0xe0] sm:$0xff] %vm1340_vm0, %v1326_v37  ;;  %v1329_v27 = vadd.f32 %v2189_v41, %v1328_v40 }
 0x2ab   : > { %1372 = vst.msk [vmem:[%s2194_s9 + $0xf8] sm:$0xff] %vm1340_vm0, %v1337_v39 }
 0x2ac   : > { %1370 = vst.msk [vmem:[%s2194_s9 + $0xe8] sm:$0xff] %vm1340_vm0, %v1329_v27 }
 0x2ad PF: > { %s17_s24 = sadd.s32 1, %s1895_s24  }
 0x2ae   : > { %p14_p4 = scmp.ge.s32.totalorder %s17_s24, 6  }
 0x2b0   :  { %16 = sbr.rel (!%p14_p4) target bundleno = 1 (0x1), region = 78 }

</bundles_post_ra>
